<compile_context>
chip_gen: v5e
topology: v5e:2x2
jax: 0.10.0
libtpu: 0.0.40
codegen_flags: <defaults>
</compile_context>

<pallas_src>
import functools

import numpy as np
import jax
import jax.numpy as jnp
from jax.experimental import pallas as pl
from jax.experimental.pallas import tpu as pltpu


def _round_up(n, mult):
    return ((n + mult - 1) // mult) * mult


def _cdiv(a, b):
    return (a + b - 1) // b


def _spec(block_shape, index_map, *, buffers=None):
    """BlockSpec with an optional explicit pipeline buffer count (safe fallback)."""
    if buffers is not None and hasattr(pl, "Buffered"):
        try:
            return pl.BlockSpec(block_shape, index_map, pipeline_mode=pl.Buffered(buffers))
        except (TypeError, ValueError):
            pass
    return pl.BlockSpec(block_shape, index_map)


def _vmem_budget():
    """~75% of this generation's per-core VMEM (48 MiB conservative fallback)."""
    cap = None
    try:
        info = pltpu.get_tpu_info()
        cap = getattr(info, "vmem_capacity_bytes", None)
    except Exception:
        cap = None
    if not cap:
        cap = 64 << 20
    return int(cap * 0.75)


# ----------------------------------------------------------------------------------------
# Kernels
# ----------------------------------------------------------------------------------------
def _res_layer_fused_kernel(x_ref, w1_ref, b1_ref, w2_ref, b2_ref, o_ref, *, mxu_dtype):
    # x_ref: (tm, D), w*: (D, D) resident, b*: (1, D) resident, o_ref: (tm, D)
    x = x_ref[...]
    h = jnp.dot(x.astype(mxu_dtype), w1_ref[...], preferred_element_type=jnp.float32)
    h = jnp.maximum(h + b1_ref[...].astype(jnp.float32), 0.0)
    h = jnp.dot(h.astype(mxu_dtype), w2_ref[...], preferred_element_type=jnp.float32)
    h = jnp.maximum(h + b2_ref[...].astype(jnp.float32), 0.0)
    o_ref[...] = (h + x.astype(jnp.float32)).astype(o_ref.dtype)


def _linear_relu_kernel(x_ref, w_ref, b_ref, o_ref, *, mxu_dtype):
    # x_ref: (tm, D) full-K, w_ref: (D, tn), b_ref: (1, tn), o_ref: (tm, tn)
    h = jnp.dot(x_ref[...].astype(mxu_dtype), w_ref[...], preferred_element_type=jnp.float32)
    h = jnp.maximum(h + b_ref[...].astype(jnp.float32), 0.0)
    o_ref[...] = h.astype(o_ref.dtype)


def _linear_relu_res_kernel(x_ref, w_ref, b_ref, r_ref, o_ref, *, mxu_dtype):
    h = jnp.dot(x_ref[...].astype(mxu_dtype), w_ref[...], preferred_element_type=jnp.float32)
    h = jnp.maximum(h + b_ref[...].astype(jnp.float32), 0.0)
    o_ref[...] = (h + r_ref[...].astype(jnp.float32)).astype(o_ref.dtype)


# ----------------------------------------------------------------------------------------
# Paths
# ----------------------------------------------------------------------------------------
def _res_layer_fused(x2, w1, b1_2d, w2, b2_2d, *, mxu_dtype, vmem_budget, tm_override):
    m, d = x2.shape
    xsize = x2.dtype.itemsize
    wsize = w1.dtype.itemsize

    resident = 2 * d * d * wsize + 4 * d * wsize          # single-buffered w1,w2,b1,b2
    slack = 4 << 20
    avail = max(0, vmem_budget - resident - slack)
    per_row = d * (2 * 2 * xsize + 2 * 4)                  # 2x-buffered x/out + ~2 f32 rows
    tm_fit = max(8, (avail // per_row) // 8 * 8)

    if tm_override is not None:
        tm_target = _round_up(max(int(tm_override), 8), 8)
    elif d <= 256:
        tm_target = 2048
    elif d <= 1024:
        tm_target = 1024
    else:
        tm_target = 512

    m8 = _round_up(m, 8)
    tm = max(8, min(tm_fit, tm_target, m8))
    # Ensure >= 2 grid steps when there is enough work so the "parallel" row axis can
    # shard across both TensorCores on v7x.
    if m8 > 256 and _cdiv(m, tm) < 2:
        tm = max(8, _round_up(_cdiv(m8, 2), 8))

    grid = (_cdiv(m, tm),)
    kernel = functools.partial(_res_layer_fused_kernel, mxu_dtype=mxu_dtype)
    return pl.pallas_call(
        kernel,
        out_shape=jax.ShapeDtypeStruct((m, d), x2.dtype),
        grid_spec=pltpu.PrefetchScalarGridSpec(
            num_scalar_prefetch=0,
            grid=grid,
            in_specs=[
                _spec((tm, d), lambda i: (i, 0)),              # x row tile (streamed)
                _spec((d, d), lambda i: (0, 0), buffers=1),    # w1 (resident, 1 buffer)
                _spec((1, d), lambda i: (0, 0), buffers=1),    # b1
                _spec((d, d), lambda i: (0, 0), buffers=1),    # w2
                _spec((1, d), lambda i: (0, 0), buffers=1),    # b2
            ],
            out_specs=_spec((tm, d), lambda i: (i, 0)),
        ),
        compiler_params=pltpu.CompilerParams(
            dimension_semantics=("parallel",),
            vmem_limit_bytes=vmem_budget,
        ),
    )(x2, w1, b1_2d, w2, b2_2d)


def _res_layer_tiled(x2, w1, b1_2d, w2, b2_2d, *, mxu_dtype, vmem_budget):
    """Fallback for large D: two N-tiled passes, full-K dot per tile, residual fused."""
    m, d = x2.shape
    xsize = x2.dtype.itemsize
    wsize = w1.dtype.itemsize
    msize = np.dtype(mxu_dtype).itemsize
    m8 = _round_up(m, 8)
    slack = 4 << 20

    # N tile must be a multiple of 128 (or the full D when D <= 128); K stays whole so
    # there is no partial-K reduction to mask.
    # TODO(synk): add K-tiled accumulation for D so large that (tm, D) x (D, tn) no longer
    # fits in VMEM.
    if d <= 128:
        tn_opts = (d,)
    else:
        tn_opts = tuple(t for t in (512, 256, 128) if t <= _round_up(d, 128))

    tm_sel, tn_sel = 8, tn_opts[-1]
    found = False
    for tn in tn_opts:
        for tm in (1024, 512, 256, 128, 64, 32, 16, 8):
            tm = _round_up(min(tm, m8), 8)
            need = 2 * (tm * d * xsize          # x tile (full K), 2 buffers
                        + d * tn * wsize        # w tile, 2 buffers
                        + 2 * tm * tn * xsize   # out tile + residual tile, 2 buffers
                        + tn * wsize)           # bias tile
            need += tm * tn * 4 + tm * d * msize  # f32 result + possible x cast copy
            if need + slack <= vmem_budget:
                tm_sel, tn_sel = tm, tn
                found = True
                break
        if found:
            break

    grid = (_cdiv(m, tm_sel), _cdiv(d, tn_sel))
    params = pltpu.CompilerParams(
        dimension_semantics=("parallel", "parallel"),
        vmem_limit_bytes=vmem_budget,
    )

    h = pl.pallas_call(
        functools.partial(_linear_relu_kernel, mxu_dtype=mxu_dtype),
        out_shape=jax.ShapeDtypeStruct((m, d), x2.dtype),
        grid_spec=pltpu.PrefetchScalarGridSpec(
            num_scalar_prefetch=0,
            grid=grid,
            in_specs=[
                _spec((tm_sel, d), lambda i, j: (i, 0)),
                _spec((d, tn_sel), lambda i, j: (0, j)),
                _spec((1, tn_sel), lambda i, j: (0, j)),
            ],
            out_specs=_spec((tm_sel, tn_sel), lambda i, j: (i, j)),
        ),
        compiler_params=params,
    )(x2, w1, b1_2d)

    out = pl.pallas_call(
        functools.partial(_linear_relu_res_kernel, mxu_dtype=mxu_dtype),
        out_shape=jax.ShapeDtypeStruct((m, d), x2.dtype),
        grid_spec=pltpu.PrefetchScalarGridSpec(
            num_scalar_prefetch=0,
            grid=grid,
            in_specs=[
                _spec((tm_sel, d), lambda i, j: (i, 0)),
                _spec((d, tn_sel), lambda i, j: (0, j)),
                _spec((1, tn_sel), lambda i, j: (0, j)),
                _spec((tm_sel, tn_sel), lambda i, j: (i, j)),   # residual x tile
            ],
            out_specs=_spec((tm_sel, tn_sel), lambda i, j: (i, j)),
        ),
        compiler_params=params,
    )(h, w2, b2_2d, x2)
    return out


# ----------------------------------------------------------------------------------------
# Public wrapper
# ----------------------------------------------------------------------------------------
@functools.partial(jax.jit, static_argnames=("tm", "use_bf16_mxu", "force_tiled"))
def res_layer(x, w1, b1, w2, b2, *, tm=None, use_bf16_mxu=False, force_tiled=False):
    """y = ReLU(ReLU(x @ w1 + b1) @ w2 + b2) + x   (PyTorch ResLayer.forward)

    x  : (..., D)
    w1 : (D, D)   (PyTorch nn.Linear weight transposed: in_dim x out_dim)
    b1 : (D,)
    w2 : (D, D)
    b2 : (D,)
    tm : optional row-tile override (rounded to a multiple of 8).
    use_bf16_mxu : cast f32 matmul operands to bf16 (f32 accumulate); small extra rounding.
    """
    orig_shape = x.shape
    d = orig_shape[-1]
    x2 = x.reshape(-1, d)
    m = x2.shape[0]

    b1_2d = b1.reshape(1, d)
    b2_2d = b2.reshape(1, d)

    mxu_dtype = np.dtype(jnp.bfloat16) if (use_bf16_mxu and x.dtype == jnp.float32) \
        else np.dtype(x.dtype)
    # Keep matmul operands in one dtype: pre-cast weights once (biases stay as-is; they
    # are added in f32 inside the kernel).
    if np.dtype(w1.dtype) != mxu_dtype:
        w1 = w1.astype(mxu_dtype)
        w2 = w2.astype(mxu_dtype)

    vmem_budget = _vmem_budget()
    xsize = x2.dtype.itemsize
    wsize = w1.dtype.itemsize

    # Can both (D, D) weights stay resident (single-buffered) next to a minimal row tile?
    resident = 2 * d * d * wsize + 4 * d * wsize
    min_stream = 2 * 2 * 8 * d * xsize + 2 * 8 * d * 4
    fused_ok = (resident + min_stream + (4 << 20)) <= vmem_budget

    if force_tiled or not fused_ok:
        out = _res_layer_tiled(x2, w1, b1_2d, w2, b2_2d,
                               mxu_dtype=mxu_dtype, vmem_budget=vmem_budget)
    else:
        out = _res_layer_fused(x2, w1, b1_2d, w2, b2_2d,
                               mxu_dtype=mxu_dtype, vmem_budget=vmem_budget,
                               tm_override=tm)
    return out.reshape(orig_shape)


def _reference(x, w1, b1, w2, b2):
    h = jnp.maximum(x @ w1 + b1, 0.0)
    h = jnp.maximum(h @ w2 + b2, 0.0)
    return h + x


if __name__ == "__main__":
    # ResLayer(in_dim, out_dim) with a residual add implies in_dim == out_dim.
    in_dim = out_dim = 32
    batch, seq = 2, 8

    key = jax.random.PRNGKey(0)
    kx, kw1, kb1, kw2, kb2 = jax.random.split(key, 5)

    x = jax.random.normal(kx, (batch, seq, in_dim), dtype=jnp.float32)

    # Deterministic parameter init (PyTorch Linear weight is (out,in); we store the
    # transpose (in,out) so the kernel does row-major matmuls).
    bound1 = 1.0 / jnp.sqrt(in_dim)
    w1 = jax.random.uniform(kw1, (in_dim, out_dim), jnp.float32, -bound1, bound1)
    b1 = jax.random.uniform(kb1, (out_dim,), jnp.float32, -bound1, bound1)
    bound2 = 1.0 / jnp.sqrt(out_dim)
    w2 = jax.random.uniform(kw2, (out_dim, out_dim), jnp.float32, -bound2, bound2)
    b2 = jax.random.uniform(kb2, (out_dim,), jnp.float32, -bound2, bound2)

    y_ref = _reference(x, w1, b1, w2, b2)

    # 1) Fused resident-weight path.
    y = jax.block_until_ready(res_layer(x, w1, b1, w2, b2))
    assert y.shape == x.shape
    assert jnp.allclose(y, y_ref, atol=1e-5, rtol=1e-5), "fused path mismatch"

    # 2) Row count that is not a multiple of 8 / of the tile (partial final row block).
    x_odd = jax.random.normal(kx, (5, 7, in_dim), dtype=jnp.float32)
    y_odd = jax.block_until_ready(res_layer(x_odd, w1, b1, w2, b2))
    assert jnp.allclose(y_odd, _reference(x_odd, w1, b1, w2, b2), atol=1e-5, rtol=1e-5), \
        "partial-tile mismatch"

    # 3) Large-D fallback path (forced at small D so it gets exercised here).
    y_tiled = jax.block_until_ready(res_layer(x, w1, b1, w2, b2, force_tiled=True))
    assert jnp.allclose(y_tiled, y_ref, atol=1e-5, rtol=1e-5), "tiled path mismatch"

    # 4) Optional bf16-MXU-operand path (f32 I/O, bf16 matmul operands, f32 accumulate).
    y_bf16 = jax.block_until_ready(res_layer(x, w1, b1, w2, b2, use_bf16_mxu=True))
    assert jnp.allclose(y_bf16, y_ref, atol=5e-2, rtol=5e-2), "bf16-MXU path mismatch"

    print("KERNEL_OK")
</pallas_src>

<mosaic_0001>
module attributes {stable_mosaic.version = 11 : i64} {
  func.func @_res_layer_fused_kernel(%arg0: i32, %arg1: memref<16x32xf32, #tpu.memory_space<vmem>>, %arg2: memref<32x32xf32, #tpu.memory_space<vmem>>, %arg3: memref<1x32xf32, #tpu.memory_space<vmem>>, %arg4: memref<32x32xf32, #tpu.memory_space<vmem>>, %arg5: memref<1x32xf32, #tpu.memory_space<vmem>>, %arg6: memref<16x32xf32, #tpu.memory_space<vmem>>) attributes {dimension_semantics = [#tpu.dimension_semantics<parallel>], iteration_bounds = array<i64: 1>, scalar_prefetch = 0 : i64, scratch_operands = 0 : i64, tpu.core_type = #tpu.core_type<tc>, window_params = [{transform_indices = @transform_0, window_bounds = array<i64: 16, 32>}, {pipeline_mode = #tpu.pipeline_mode<synchronous>, transform_indices = @transform_1, window_bounds = array<i64: 32, 32>}, {pipeline_mode = #tpu.pipeline_mode<synchronous>, transform_indices = @transform_2, window_bounds = array<i64: 1, 32>}, {pipeline_mode = #tpu.pipeline_mode<synchronous>, transform_indices = @transform_3, window_bounds = array<i64: 32, 32>}, {pipeline_mode = #tpu.pipeline_mode<synchronous>, transform_indices = @transform_4, window_bounds = array<i64: 1, 32>}, {transform_indices = @transform_5, window_bounds = array<i64: 16, 32>}]} {
    %c0 = arith.constant 0 : index
    %c0_0 = arith.constant 0 : index
    %0 = vector.load %arg1[%c0, %c0_0] : memref<16x32xf32, #tpu.memory_space<vmem>>, vector<16x32xf32>
    %c0_1 = arith.constant 0 : index
    %c0_2 = arith.constant 0 : index
    %1 = vector.load %arg2[%c0_1, %c0_2] : memref<32x32xf32, #tpu.memory_space<vmem>>, vector<32x32xf32>
    %cst = arith.constant dense<0.000000e+00> : vector<16x32xf32>
    %2 = tpu.matmul %0, %1, %cst {dimension_numbers = #tpu.dot_dimension_numbers<[1], [0], [0], [1], [0, 0, 1, 1], [], []>} : vector<16x32xf32>, vector<32x32xf32>, vector<16x32xf32> -> vector<16x32xf32>
    %c0_3 = arith.constant 0 : index
    %c0_4 = arith.constant 0 : index
    %3 = vector.load %arg3[%c0_3, %c0_4] : memref<1x32xf32, #tpu.memory_space<vmem>>, vector<1x32xf32>
    %4 = vector.broadcast %3 : vector<1x32xf32> to vector<16x32xf32>
    %5 = arith.addf %2, %4 : vector<16x32xf32>
    %cst_5 = arith.constant 0.000000e+00 : f32
    %6 = vector.broadcast %cst_5 : f32 to vector<16x32xf32>
    %7 = arith.maximumf %5, %6 : vector<16x32xf32>
    %c0_6 = arith.constant 0 : index
    %c0_7 = arith.constant 0 : index
    %8 = vector.load %arg4[%c0_6, %c0_7] : memref<32x32xf32, #tpu.memory_space<vmem>>, vector<32x32xf32>
    %cst_8 = arith.constant dense<0.000000e+00> : vector<16x32xf32>
    %9 = tpu.matmul %7, %8, %cst_8 {dimension_numbers = #tpu.dot_dimension_numbers<[1], [0], [0], [1], [0, 0, 1, 1], [], []>} : vector<16x32xf32>, vector<32x32xf32>, vector<16x32xf32> -> vector<16x32xf32>
    %c0_9 = arith.constant 0 : index
    %c0_10 = arith.constant 0 : index
    %10 = vector.load %arg5[%c0_9, %c0_10] : memref<1x32xf32, #tpu.memory_space<vmem>>, vector<1x32xf32>
    %11 = vector.broadcast %10 : vector<1x32xf32> to vector<16x32xf32>
    %12 = arith.addf %9, %11 : vector<16x32xf32>
    %cst_11 = arith.constant 0.000000e+00 : f32
    %13 = vector.broadcast %cst_11 : f32 to vector<16x32xf32>
    %14 = arith.maximumf %12, %13 : vector<16x32xf32>
    %15 = arith.addf %14, %0 : vector<16x32xf32>
    %c0_12 = arith.constant 0 : index
    %c0_13 = arith.constant 0 : index
    %16 = vector.load %arg6[%c0_12, %c0_13] : memref<16x32xf32, #tpu.memory_space<vmem>>, vector<16x32xf32>
    tpu.vector_store %arg6[%c0_12, %c0_13], %15 {strides = array<i32>} : memref<16x32xf32, #tpu.memory_space<vmem>>, vector<16x32xf32>,
    return
  }
  func.func @transform_0(%arg0: i32) -> (i32, i32) {
    %c0_i32 = arith.constant 0 : i32
    %c0_i32_0 = arith.constant 0 : i32
    return %arg0, %c0_i32 : i32, i32
  }
  func.func @transform_1(%arg0: i32) -> (i32, i32) {
    %c0_i32 = arith.constant 0 : i32
    %c0_i32_0 = arith.constant 0 : i32
    %c0_i32_1 = arith.constant 0 : i32
    return %c0_i32, %c0_i32_0 : i32, i32
  }
  func.func @transform_2(%arg0: i32) -> (i32, i32) {
    %c0_i32 = arith.constant 0 : i32
    %c0_i32_0 = arith.constant 0 : i32
    %c0_i32_1 = arith.constant 0 : i32
    return %c0_i32, %c0_i32_0 : i32, i32
  }
  func.func @transform_3(%arg0: i32) -> (i32, i32) {
    %c0_i32 = arith.constant 0 : i32
    %c0_i32_0 = arith.constant 0 : i32
    %c0_i32_1 = arith.constant 0 : i32
    return %c0_i32, %c0_i32_0 : i32, i32
  }
  func.func @transform_4(%arg0: i32) -> (i32, i32) {
    %c0_i32 = arith.constant 0 : i32
    %c0_i32_0 = arith.constant 0 : i32
    %c0_i32_1 = arith.constant 0 : i32
    return %c0_i32, %c0_i32_0 : i32, i32
  }
  func.func @transform_5(%arg0: i32) -> (i32, i32) {
    %c0_i32 = arith.constant 0 : i32
    %c0_i32_0 = arith.constant 0 : i32
    return %arg0, %c0_i32 : i32, i32
  }
}

</mosaic_0001>

<bundles_post_ra>
// kernel: res_layer.1
= control target key start
LH: loop header
LB: loop body
LE: loop exit
PB: predicated region body
PF: predicated region fallthrough
CT: control target
= control target key end

     0   :  { %10 = vsyncpa [#allocation3], 0  ;;  %s367_s0 = inlined_call_operand.hbm [shape: f32[16,32], index: 0, kind: input, shape index: {}]   ;;  %s368_s1 = inlined_call_operand.hbm [shape: f32[32,32], index: 1, kind: input, shape index: {}]   ;;  %s369_s2 = inlined_call_operand.vmem [shape: f32[1,32], index: 2, kind: input, shape index: {}]   ;;  %s370_s3 = inlined_call_operand.hbm [shape: f32[32,32], index: 3, kind: input, shape index: {}]   ;;  %s371_s4 = inlined_call_operand.vmem [shape: f32[1,32], index: 4, kind: input, shape index: {}]   ;;  %s372_s5 = inlined_call_operand.hbm [shape: f32[16,32], index: 5, kind: output, shape index: {}]  }
   0x1   :  { %11 = vsyncpa [#allocation6], 0 }
   0x2   :  { %12 = vsyncpa [#allocation4], 0  ;;  %s30_s20 = sshll.u32 %s368_s1, 4  ;;  %s295_s21 = smov [#allocation5]   ;;  %s31_s20 = int_to_ptr.hbm [resolvable:$true] %s30_s20 }
   0x3   :  { %s32_s22 = sshll.u32 %s295_s21, 4  ;;  %s17_s25 = sshll.u32 %s367_s0, 4  ;;  %s33_s22 = int_to_ptr.vmem [resolvable:$true] %s32_s22  ;;  %s18_s25 = int_to_ptr.hbm [resolvable:$true] %s17_s25 }
   0x4   :  { %s296_s26 = smov 128   ;;  %s297_s27 = smov 8  }
   0x5   :  { %38 = dma.hbm_to_vmem [thread:$0]  %s31_s20, 512, %s33_s22, [#allocation6], %s296_s26, %s296_s26, %s297_s27  }
   0x6   :  { %s298_s28 = smov [#allocation2]   ;;  %s45_s1 = sshll.u32 %s370_s3, 4  ;;  %s46_s1 = int_to_ptr.hbm [resolvable:$true] %s45_s1 }
   0x7   :  { %s19_s29 = sshll.u32 %s298_s28, 4  ;;  %s299_s0 = smov [#allocation7]   ;;  %s20_s29 = int_to_ptr.vmem [resolvable:$true] %s19_s29 }
   0x8   :  { %25 = dma.hbm_to_vmem [thread:$0]  %s18_s25, 256, %s20_s29, [#allocation3], %s296_s26, %s296_s26, %s297_s27  }
   0x9   :  { %s47_s7 = sshll.u32 %s299_s0, 4  ;;  %s48_s7 = int_to_ptr.vmem [resolvable:$true] %s47_s7 }
   0xa   :  { %53 = dma.hbm_to_vmem [thread:$0]  %s46_s1, 512, %s48_s7, [#allocation6], %s296_s26, %s296_s26, %s297_s27  }
   0xb   :  { %289 = dma.done.wait [#allocation3], 256  }
   0xc   :  { %290 = vsyncadd [#allocation3], 4294967040 }
   0xd   :  { %291 = dma.done.wait [#allocation6], 1024  }
   0xe   :  { %292 = vsyncadd [#allocation6], 4294966272  ;;  %v73_v0 = vld [vmem:[#allocation5 + $0x18] sm:$0xff]  ;;  %v72_v1 = vld [vmem:[#allocation5 + $0x10] sm:$0xff]  ;;  %vm78_vm0 = vcmask 261120   ;;  %s159_s14 = sshll.u32 %s372_s5, 4  ;;  %s160_s14 = int_to_ptr.hbm [resolvable:$true] %s159_s14 }
   0xf   :  { %177 = vmatpush.msra.mxu2 %v73_v0  ;;  %97 = vmatpush.msra.mxu0 %v73_v0  ;;  %v71_v2 = vld [vmem:[#allocation5 + $0x8] sm:$0xff]  ;;  %v113_v3 = vld [vmem:[#allocation7 + $0x18] sm:$0xff]  ;;  %v70_v4 = vld [vmem:[#allocation5] sm:$0xff] }
  0x10   :  { %181 = vmatpush.msra.mxu3 %v113_v3  ;;  %136 = vmatpush.msra.mxu1 %v113_v3  ;;  %v69_v5 = vld [vmem:[#allocation2 + $0x8] sm:$0xff]  ;;  %v68_v6 = vld [vmem:[#allocation2] sm:$0xff]  ;;  %v111_v8 = vld [vmem:[#allocation7 + $0x8] sm:$0xff] }
  0x11   :  { %178 = vmatpush.msra.mxu2 %v72_v1  ;;  %98 = vmatpush.msra.mxu0 %v72_v1  ;;  %v112_v7 = vld [vmem:[#allocation7 + $0x10] sm:$0xff]  ;;  %v110_v9 = vld [vmem:[#allocation7] sm:$0xff] }
  0x12   :  { %182 = vmatpush.msra.mxu3 %v112_v7  ;;  %137 = vmatpush.msra.mxu1 %v112_v7  ;;  %v191_v10 = vld [vmem:[%s369_s2] ss:$0 sm:$0xff]  ;;  %s300_s2 = smov [#allocation8]  }
  0x13   :  { %179 = vmatpush.msra.mxu2 %v71_v2  ;;  %99 = vmatpush.msra.mxu0 %v71_v2  ;;  %v192_v17 = vld [vmem:[%s371_s4] ss:$0 sm:$0xff]  ;;  %s157_s11 = sshll.u32 %s300_s2, 4  ;;  %s158_s11 = int_to_ptr.vmem [resolvable:$true] %s157_s11 }
  0x14   :  { %183 = vmatpush.msra.mxu3 %v111_v8  ;;  %138 = vmatpush.msra.mxu1 %v111_v8 }
  0x15   :  { %180 = vmatpush.msra.mxu2 %v70_v4  ;;  %100 = vmatpush.msra.mxu0 %v70_v4 }
  0x16   :  { %174 = vmatmul.msk.f32.vlgmr.msra.gmra.mxu2 %vm78_vm0, %v69_v5  ;;  %173 = vmatmul.msk.f32.vlgmr.msra.gmra.mxu0 %vm78_vm0, %v68_v6 }
  0x17   :  { %184 = vmatpush.msra.mxu3 %v110_v9  ;;  %139 = vmatpush.msra.mxu1 %v110_v9 }
  0x93   :  { %v102_v11 = vpop.f32.mrf.mxu0 }
  0x94   :  { %v103_v12 = vadd.f32 %v191_v10, %v102_v11 }
  0x96   :  { %v108_v13 = vmax.f32 %v103_v12, 0.0 }
  0x98   :  { %175 = vmatmul.msk.f32.vlgmr.msra.gmra.mxu1 %vm78_vm0, %v108_v13 }
  0x99   :  { %v105_v14 = vpop.f32.mrf.mxu2 }
  0x9a   :  { %v106_v15 = vadd.f32 %v191_v10, %v105_v14 }
  0x9c   :  { %v109_v16 = vmax.f32 %v106_v15, 0.0 }
  0x9e   :  { %176 = vmatmul.msk.f32.vlgmr.msra.gmra.mxu3 %vm78_vm0, %v109_v16 }
 0x115   :  { %v141_v18 = vpop.f32.mrf.mxu1 }
 0x116   :  { %v142_v19 = vadd.f32 %v192_v17, %v141_v18 }
 0x118   :  { %v147_v20 = vmax.f32 %v142_v19, 0.0 }
 0x11a   :  { %v149_v21 = vadd.f32 %v147_v20, %v68_v6 }
 0x11c   :  { %151 = vst.msk [vmem:[#allocation8] sm:$0xff] %vm78_vm0, %v149_v21 }
 0x121   :  { %v144_v22 = vpop.f32.mrf.mxu3 }
 0x122   :  { %v145_v23 = vadd.f32 %v192_v17, %v144_v22 }
 0x124   :  { %v148_v24 = vmax.f32 %v145_v23, 0.0 }
 0x126   :  { %v150_v25 = vadd.f32 %v148_v24, %v69_v5 }
 0x128   :  { %152 = vst.msk [vmem:[#allocation8 + $0x8] sm:$0xff] %vm78_vm0, %v150_v25 }
 0x129   :  { %165 = dma.vmem_to_hbm [thread:$0]  %s158_s11, 256, %s160_s14, [#allocation4], %s296_s26, %s296_s26, %s297_s27  }
 0x12a   :  { %293 = dma.done.wait [#allocation4], 256  }
 0x12b   :  { %294 = vsyncadd [#allocation4], 4294967040 }
 0x12c   :  { %170 = vsyncpa [#allocation3], 1 }
 0x12d   :  { %171 = vsyncpa [#allocation6], 1 }
 0x12e   :  { %172 = vsyncpa [#allocation4], 1 }

</bundles_post_ra>
